<compile_context>
chip_gen: v5e
topology: v5e:2x2
jax: 0.10.0
libtpu: 0.0.40
codegen_flags: <defaults>
</compile_context>

<pallas_src>
import functools
import math

import jax
import jax.numpy as jnp
from jax.experimental import pallas as pl
from jax.experimental.pallas import tpu as pltpu

_NEG_INF = -1.0e30


def _flash_attn_kernel(*refs, scale, has_mask, lk, tk, needs_k_mask):
    if has_mask:
        (q_ref, k_ref, v_ref, mask_ref,
         ctx_ref, scores_ref, m_scr, l_scr, acc_scr) = refs
    else:
        (q_ref, k_ref, v_ref,
         ctx_ref, scores_ref, m_scr, l_scr, acc_scr) = refs
        mask_ref = None

    ki = pl.program_id(2)
    nk = pl.num_programs(2)

    @pl.when(ki == 0)
    def _init():
        m_scr[...] = jnp.full(m_scr.shape, _NEG_INF, dtype=m_scr.dtype)
        l_scr[...] = jnp.zeros(l_scr.shape, dtype=l_scr.dtype)
        acc_scr[...] = jnp.zeros(acc_scr.shape, dtype=acc_scr.dtype)

    q = q_ref[...]          # (TQ, dk)
    k = k_ref[...]          # (TK, dk)
    v = v_ref[...]          # (TK, dv)

    # Fold 1/sqrt(d_k) into Q: O(TQ*dk) work instead of O(TQ*TK).
    q = q * jnp.array(scale, dtype=q.dtype)

    # scores block = (Q*scale) @ K^T (+ mask); contract last dims directly so no
    # transpose is materialized; f32 accumulation on the MXU.
    s = jax.lax.dot_general(q, k, (((1,), (1,)), ((), ())),
                            preferred_element_type=jnp.float32)
    if mask_ref is not None:
        s = s + mask_ref[...].astype(jnp.float32)

    # Dense pre-softmax scores (module contract); padded columns of the last
    # Lk block are dropped on writeback.
    scores_ref[...] = s.astype(scores_ref.dtype)

    if needs_k_mask:
        # Only compiled in when Lk % TK != 0: mask padded key columns out of the
        # softmax and zero padded V rows so garbage can never reach valid rows.
        col = ki * tk + jax.lax.broadcasted_iota(jnp.int32, s.shape, 1)
        s = jnp.where(col < lk, s, _NEG_INF)
        row = ki * tk + jax.lax.broadcasted_iota(jnp.int32, (v.shape[0], 1), 0)
        v = jnp.where(row < lk, v, jnp.zeros_like(v))

    # Online-softmax accumulation across Lk blocks.
    m_prev = m_scr[...]
    m_new = jnp.maximum(m_prev, jnp.max(s, axis=-1, keepdims=True))
    alpha = jnp.exp(m_prev - m_new)
    p = jnp.exp(s - m_new)
    l_scr[...] = alpha * l_scr[...] + jnp.sum(p, axis=-1, keepdims=True)
    acc_scr[...] = alpha * acc_scr[...] + jnp.dot(
        p.astype(v.dtype), v, preferred_element_type=jnp.float32)
    m_scr[...] = m_new

    @pl.when(ki == nk - 1)
    def _finalize():
        denom = l_scr[...]
        inv = pl.reciprocal(denom, approx=True)
        inv = inv * (2.0 - denom * inv)          # one Newton step -> f32-accurate
        ctx_ref[...] = (acc_scr[...] * inv).astype(ctx_ref.dtype)


def _vmem_capacity_bytes():
    try:
        info = pltpu.get_tpu_info()
        cap = int(getattr(info, "vmem_capacity_bytes", 0) or 0)
        if cap > 0:
            return cap
    except Exception:
        pass
    return 64 << 20   # conservative fallback (v7x physical VMEM)


def scaled_dot_product_attention(Q, K, V, attn_mask=None, res_att=None, *, d_k=None):
    """Pallas-backed equivalent of ScaledDotProductAttention.forward.

    Q: [B, H, Lq, d_k], K: [B, H, Lk, d_k], V: [B, H, Lk, d_v],
    attn_mask: [B, H, Lq, Lk] (or broadcastable over B/H) or None.
    res_att is accepted and ignored (unused by the reference forward).
    Returns (context, scores); scores are pre-softmax (mask included) in Q.dtype.
    """
    del res_att  # unused by the reference forward pass
    B, H, Lq, dk = Q.shape
    Lk = K.shape[2]
    dv = V.shape[3]
    if d_k is None:
        d_k = dk
    scale = 1.0 / math.sqrt(d_k)

    BH = B * H
    q3 = Q.reshape(BH, Lq, dk)
    k3 = K.reshape(BH, Lk, dk)
    v3 = V.reshape(BH, Lk, dv)

    has_mask = attn_mask is not None
    if has_mask and not jnp.issubdtype(attn_mask.dtype, jnp.floating):
        # Reference adds the mask numerically; cast non-float masks to f32.
        attn_mask = attn_mask.astype(jnp.float32)

    q_isz = jnp.dtype(Q.dtype).itemsize
    m_isz = jnp.dtype(attn_mask.dtype).itemsize if has_mask else 0

    # MXU-aligned tiles; shrink only if the per-step working set would not fit.
    TQ = Lq if Lq <= 256 else 256
    TK = Lk if Lk <= 512 else 512

    vmem_cap = _vmem_capacity_bytes()

    def step_bytes(tq, tk):
        blocks = (tq * dk * q_isz + tk * dk * q_isz + tk * dv * q_isz
                  + tq * tk * m_isz + tq * dv * q_isz + tq * tk * q_isz)
        temps = 3 * tq * tk * 4 + tq * dv * 4
        scratch = (2 * tq + tq * dv) * 4
        return 2 * blocks + temps + scratch          # 2x for double-buffering

    budget = int(vmem_cap * 0.5)
    while step_bytes(TQ, TK) > budget:
        if TK >= 256 and TK % 256 == 0:
            TK //= 2
        elif TQ >= 128 and TQ % 16 == 0:
            TQ //= 2
        else:
            break

    nq = pl.cdiv(Lq, TQ)
    nk = pl.cdiv(Lk, TK)
    needs_k_mask = (Lk % TK) != 0
    grid = (BH, nq, nk)

    # Leading batch*head block dim is squeezed (None) -> kernel sees 2-D refs.
    in_specs = [
        pl.BlockSpec((None, TQ, dk), lambda bh, qi, ki: (bh, qi, 0)),
        pl.BlockSpec((None, TK, dk), lambda bh, qi, ki: (bh, ki, 0)),
        pl.BlockSpec((None, TK, dv), lambda bh, qi, ki: (bh, ki, 0)),
    ]
    inputs = [q3, k3, v3]

    if has_mask:
        mB, mH = attn_mask.shape[0], attn_mask.shape[1]
        if attn_mask.shape[2] != Lq or attn_mask.shape[3] != Lk:
            attn_mask = jnp.broadcast_to(attn_mask, (mB, mH, Lq, Lk))
        # Encode the B/H broadcast in the index_map; never materialize it.
        m3 = attn_mask.reshape(mB * mH, Lq, Lk)
        if mB == B and mH == H:
            midx = lambda bh, qi, ki: (bh, qi, ki)
        elif mB == 1 and mH == 1:
            midx = lambda bh, qi, ki: (0, qi, ki)
        elif mB == B and mH == 1:
            midx = lambda bh, qi, ki: (bh // H, qi, ki)
        elif mB == 1 and mH == H:
            midx = lambda bh, qi, ki: (bh % H, qi, ki)
        else:  # unusual partial broadcast: fall back to materializing it
            m3 = jnp.broadcast_to(attn_mask, (B, H, Lq, Lk)).reshape(BH, Lq, Lk)
            midx = lambda bh, qi, ki: (bh, qi, ki)
        in_specs.append(pl.BlockSpec((None, TQ, TK), midx))
        inputs.append(m3)

    out_specs = [
        pl.BlockSpec((None, TQ, dv), lambda bh, qi, ki: (bh, qi, 0)),   # resident over ki
        pl.BlockSpec((None, TQ, TK), lambda bh, qi, ki: (bh, qi, ki)),
    ]
    out_shape = (
        jax.ShapeDtypeStruct((BH, Lq, dv), Q.dtype),
        jax.ShapeDtypeStruct((BH, Lq, Lk), Q.dtype),
    )

    scratch_shapes = [
        pltpu.VMEM((TQ, 1), jnp.float32),     # running row max  m
        pltpu.VMEM((TQ, 1), jnp.float32),     # running denom    l
        pltpu.VMEM((TQ, dv), jnp.float32),    # running context  acc
    ]

    upper = max(int(vmem_cap * 0.75), 32 << 20)
    vmem_limit = int(min(max(2 * step_bytes(TQ, TK) + (8 << 20), 32 << 20), upper))

    bytes_accessed = (
        BH * Lq * dk * q_isz                       # Q read once
        + BH * nq * Lk * (dk + dv) * q_isz         # K/V re-read per query tile
        + (BH * Lq * Lk * m_isz if has_mask else 0)
        + BH * Lq * dv * q_isz                     # context out
        + BH * Lq * Lk * q_isz                     # scores out
    )
    cost = pl.CostEstimate(
        flops=2 * BH * Lq * Lk * (dk + dv),
        transcendentals=BH * Lq * Lk,
        bytes_accessed=int(bytes_accessed),
    )

    kernel = functools.partial(
        _flash_attn_kernel, scale=scale, has_mask=has_mask,
        lk=Lk, tk=TK, needs_k_mask=needs_k_mask)

    ctx3, scores3 = pl.pallas_call(
        kernel,
        out_shape=out_shape,
        grid_spec=pltpu.PrefetchScalarGridSpec(
            num_scalar_prefetch=0,
            grid=grid,
            in_specs=in_specs,
            out_specs=out_specs,
            scratch_shapes=scratch_shapes,
        ),
        compiler_params=pltpu.CompilerParams(
            dimension_semantics=("parallel", "parallel", "arbitrary"),
            vmem_limit_bytes=vmem_limit,
        ),
        cost_estimate=cost,
    )(*inputs)

    context = ctx3.reshape(B, H, Lq, dv)
    scores = scores3.reshape(B, H, Lq, Lk)
    return context, scores


def _reference(Q, K, V, attn_mask, d_k):
    scores = jnp.matmul(Q, jnp.swapaxes(K, -1, -2)) / math.sqrt(d_k)
    if attn_mask is not None:
        scores = scores + attn_mask
    attn = jax.nn.softmax(scores, axis=-1)
    ctx = jnp.matmul(attn, V)
    return ctx, scores


def _check(name, got, ref, atol=5e-2, rtol=5e-2):
    assert jnp.allclose(got, ref, atol=atol, rtol=rtol), (
        f"{name} mismatch: max abs err = {float(jnp.max(jnp.abs(got - ref)))}")


if __name__ == "__main__":
    key = jax.random.PRNGKey(0)

    # --- Case 1: small shapes matching the module's typical use --------------
    # batch=2, n_heads=3 (num_of_d), seq_len=8, d_k=d_v=32, with a full mask.
    B, H, L, DK, DV = 2, 3, 8, 32, 32
    kq, kk, kv, km = jax.random.split(key, 4)
    Q1 = jax.random.normal(kq, (B, H, L, DK), dtype=jnp.float32)
    K1 = jax.random.normal(kk, (B, H, L, DK), dtype=jnp.float32)
    V1 = jax.random.normal(kv, (B, H, L, DV), dtype=jnp.float32)
    M1 = 0.1 * jax.random.normal(km, (B, H, L, L), dtype=jnp.float32)
    R1 = jnp.zeros((B, H, L, L), dtype=jnp.float32)  # res_att: unused by forward

    ctx1, sc1 = scaled_dot_product_attention(Q1, K1, V1, M1, R1, d_k=DK)
    ctx1 = jax.block_until_ready(ctx1)
    sc1 = jax.block_until_ready(sc1)
    rctx1, rsc1 = _reference(Q1, K1, V1, M1, DK)
    _check("case1 scores", sc1, rsc1)
    _check("case1 context", ctx1, rctx1)

    # --- Case 2: Lq-tiled grid (TQ=256) and the mask=None fast path ----------
    B2, H2, L2, D2 = 1, 2, 256, 64
    k2 = jax.random.split(jax.random.PRNGKey(1), 3)
    Q2 = jax.random.normal(k2[0], (B2, H2, L2, D2), dtype=jnp.float32)
    K2 = jax.random.normal(k2[1], (B2, H2, L2, D2), dtype=jnp.float32)
    V2 = jax.random.normal(k2[2], (B2, H2, L2, D2), dtype=jnp.float32)

    ctx2, sc2 = scaled_dot_product_attention(Q2, K2, V2, None, None, d_k=D2)
    ctx2 = jax.block_until_ready(ctx2)
    sc2 = jax.block_until_ready(sc2)
    rctx2, rsc2 = _reference(Q2, K2, V2, None, D2)
    _check("case2 scores", sc2, rsc2)
    _check("case2 context", ctx2, rctx2)

    # --- Case 3: flash Lk split (2 blocks, padded last block) + head-broadcast
    # mask encoded via index_map.
    B3, H3, LQ3, LK3, D3 = 1, 2, 128, 576, 64
    k3 = jax.random.split(jax.random.PRNGKey(2), 4)
    Q3 = jax.random.normal(k3[0], (B3, H3, LQ3, D3), dtype=jnp.float32)
    K3 = jax.random.normal(k3[1], (B3, H3, LK3, D3), dtype=jnp.float32)
    V3 = jax.random.normal(k3[2], (B3, H3, LK3, D3), dtype=jnp.float32)
    M3 = 0.1 * jax.random.normal(k3[3], (1, H3, LQ3, LK3), dtype=jnp.float32)

    ctx3, sc3 = scaled_dot_product_attention(Q3, K3, V3, M3, None, d_k=D3)
    ctx3 = jax.block_until_ready(ctx3)
    sc3 = jax.block_until_ready(sc3)
    rctx3, rsc3 = _reference(Q3, K3, V3, M3, D3)
    _check("case3 scores", sc3, rsc3)
    _check("case3 context", ctx3, rctx3)

    print("KERNEL_OK")
</pallas_src>

<mosaic_0001>
module attributes {stable_mosaic.version = 11 : i64} {
  func.func @_flash_attn_kernel(%arg0: i32, %arg1: i32, %arg2: i32, %arg3: memref<1x8x32xf32, #tpu.memory_space<vmem>>, %arg4: memref<1x8x32xf32, #tpu.memory_space<vmem>>, %arg5: memref<1x8x32xf32, #tpu.memory_space<vmem>>, %arg6: memref<1x8x8xf32, #tpu.memory_space<vmem>>, %arg7: memref<1x8x32xf32, #tpu.memory_space<vmem>>, %arg8: memref<1x8x8xf32, #tpu.memory_space<vmem>>, %arg9: memref<8x1xf32, #tpu.memory_space<vmem>>, %arg10: memref<8x1xf32, #tpu.memory_space<vmem>>, %arg11: memref<8x32xf32, #tpu.memory_space<vmem>>) attributes {dimension_semantics = [#tpu.dimension_semantics<parallel>, #tpu.dimension_semantics<parallel>, #tpu.dimension_semantics<arbitrary>], iteration_bounds = array<i64: 6, 1, 1>, scalar_prefetch = 0 : i64, scratch_operands = 3 : i64, tpu.core_type = #tpu.core_type<tc>, window_params = [{transform_indices = @transform_0, window_bounds = array<i64: 1, 8, 32>}, {transform_indices = @transform_1, window_bounds = array<i64: 1, 8, 32>}, {transform_indices = @transform_2, window_bounds = array<i64: 1, 8, 32>}, {transform_indices = @transform_3, window_bounds = array<i64: 1, 8, 8>}, {transform_indices = @transform_4, window_bounds = array<i64: 1, 8, 32>}, {transform_indices = @transform_5, window_bounds = array<i64: 1, 8, 8>}]} {
    %c0_i32 = arith.constant 0 : i32
    %0 = arith.cmpi eq, %arg2, %c0_i32 : i32
    %1 = arith.extui %0 : i1 to i32
    %c0_i32_0 = arith.constant 0 : i32
    %2 = arith.cmpi ne, %1, %c0_i32_0 : i32
    scf.if %2 {
      %cst_33 = arith.constant -1.000000e+30 : f32
      %43 = vector.broadcast %cst_33 : f32 to vector<8x1xf32>
      %c0_34 = arith.constant 0 : index
      %c0_35 = arith.constant 0 : index
      %44 = vector.load %arg9[%c0_34, %c0_35] : memref<8x1xf32, #tpu.memory_space<vmem>>, vector<8x1xf32>
      tpu.vector_store %arg9[%c0_34, %c0_35], %43 {strides = array<i32>} : memref<8x1xf32, #tpu.memory_space<vmem>>, vector<8x1xf32>,
      %cst_36 = arith.constant 0.000000e+00 : f32
      %45 = vector.broadcast %cst_36 : f32 to vector<8x1xf32>
      %c0_37 = arith.constant 0 : index
      %c0_38 = arith.constant 0 : index
      %46 = vector.load %arg10[%c0_37, %c0_38] : memref<8x1xf32, #tpu.memory_space<vmem>>, vector<8x1xf32>
      tpu.vector_store %arg10[%c0_37, %c0_38], %45 {strides = array<i32>} : memref<8x1xf32, #tpu.memory_space<vmem>>, vector<8x1xf32>,
      %cst_39 = arith.constant 0.000000e+00 : f32
      %47 = vector.broadcast %cst_39 : f32 to vector<8x32xf32>
      %c0_40 = arith.constant 0 : index
      %c0_41 = arith.constant 0 : index
      %48 = vector.load %arg11[%c0_40, %c0_41] : memref<8x32xf32, #tpu.memory_space<vmem>>, vector<8x32xf32>
      tpu.vector_store %arg11[%c0_40, %c0_41], %47 {strides = array<i32>} : memref<8x32xf32, #tpu.memory_space<vmem>>, vector<8x32xf32>,
    } else {
    }
    %c0 = arith.constant 0 : index
    %c0_1 = arith.constant 0 : index
    %c0_2 = arith.constant 0 : index
    %3 = vector.load %arg3[%c0, %c0_1, %c0_2] : memref<1x8x32xf32, #tpu.memory_space<vmem>>, vector<1x8x32xf32>
    %4 = vector.shape_cast %3 : vector<1x8x32xf32> to vector<8x32xf32>
    %c0_3 = arith.constant 0 : index
    %c0_4 = arith.constant 0 : index
    %c0_5 = arith.constant 0 : index
    %5 = vector.load %arg4[%c0_3, %c0_4, %c0_5] : memref<1x8x32xf32, #tpu.memory_space<vmem>>, vector<1x8x32xf32>
    %6 = vector.shape_cast %5 : vector<1x8x32xf32> to vector<8x32xf32>
    %c0_6 = arith.constant 0 : index
    %c0_7 = arith.constant 0 : index
    %c0_8 = arith.constant 0 : index
    %7 = vector.load %arg5[%c0_6, %c0_7, %c0_8] : memref<1x8x32xf32, #tpu.memory_space<vmem>>, vector<1x8x32xf32>
    %8 = vector.shape_cast %7 : vector<1x8x32xf32> to vector<8x32xf32>
    %cst = arith.constant 0.176776692 : f32
    %9 = vector.broadcast %cst : f32 to vector<8x32xf32>
    %10 = arith.mulf %4, %9 : vector<8x32xf32>
    %cst_9 = arith.constant dense<0.000000e+00> : vector<8x8xf32>
    %11 = tpu.matmul %10, %6, %cst_9 {dimension_numbers = #tpu.dot_dimension_numbers<[1], [1], [0], [0], [0, 0, 1, 0], [], []>} : vector<8x32xf32>, vector<8x32xf32>, vector<8x8xf32> -> vector<8x8xf32>
    %c0_10 = arith.constant 0 : index
    %c0_11 = arith.constant 0 : index
    %c0_12 = arith.constant 0 : index
    %12 = vector.load %arg6[%c0_10, %c0_11, %c0_12] : memref<1x8x8xf32, #tpu.memory_space<vmem>>, vector<1x8x8xf32>
    %13 = vector.shape_cast %12 : vector<1x8x8xf32> to vector<8x8xf32>
    %14 = arith.addf %11, %13 : vector<8x8xf32>
    %c0_13 = arith.constant 0 : index
    %c0_14 = arith.constant 0 : index
    %c0_15 = arith.constant 0 : index
    %15 = vector.load %arg8[%c0_13, %c0_14, %c0_15] : memref<1x8x8xf32, #tpu.memory_space<vmem>>, vector<1x8x8xf32>
    %16 = vector.shape_cast %15 : vector<1x8x8xf32> to vector<8x8xf32>
    %17 = vector.shape_cast %14 : vector<8x8xf32> to vector<1x8x8xf32>
    tpu.vector_store %arg8[%c0_13, %c0_14, %c0_15], %17 {strides = array<i32>} : memref<1x8x8xf32, #tpu.memory_space<vmem>>, vector<1x8x8xf32>,
    %c0_16 = arith.constant 0 : index
    %c0_17 = arith.constant 0 : index
    %18 = vector.load %arg9[%c0_16, %c0_17] : memref<8x1xf32, #tpu.memory_space<vmem>>, vector<8x1xf32>
    %cst_18 = arith.constant dense<0xFF800000> : vector<8xf32>
    %19 = vector.multi_reduction <maximumf>, %14, %cst_18 [1] : vector<8x8xf32> to vector<8xf32>
    %20 = vector.shape_cast %19 : vector<8xf32> to vector<8x1xf32>
    %21 = arith.maximumf %18, %20 : vector<8x1xf32>
    %22 = arith.subf %18, %21 : vector<8x1xf32>
    %23 = math.exp %22 : vector<8x1xf32>
    %24 = vector.broadcast %21 : vector<8x1xf32> to vector<8x8xf32>
    %25 = arith.subf %14, %24 : vector<8x8xf32>
    %26 = math.exp %25 : vector<8x8xf32>
    %c0_19 = arith.constant 0 : index
    %c0_20 = arith.constant 0 : index
    %27 = vector.load %arg10[%c0_19, %c0_20] : memref<8x1xf32, #tpu.memory_space<vmem>>, vector<8x1xf32>
    %28 = arith.mulf %23, %27 : vector<8x1xf32>
    %cst_21 = arith.constant dense<0.000000e+00> : vector<8xf32>
    %29 = vector.multi_reduction <add>, %26, %cst_21 [1] : vector<8x8xf32> to vector<8xf32>
    %30 = vector.shape_cast %29 : vector<8xf32> to vector<8x1xf32>
    %31 = arith.addf %28, %30 : vector<8x1xf32>
    %c0_22 = arith.constant 0 : index
    %c0_23 = arith.constant 0 : index
    %32 = vector.load %arg10[%c0_22, %c0_23] : memref<8x1xf32, #tpu.memory_space<vmem>>, vector<8x1xf32>
    tpu.vector_store %arg10[%c0_22, %c0_23], %31 {strides = array<i32>} : memref<8x1xf32, #tpu.memory_space<vmem>>, vector<8x1xf32>,
    %c0_24 = arith.constant 0 : index
    %c0_25 = arith.constant 0 : index
    %33 = vector.load %arg11[%c0_24, %c0_25] : memref<8x32xf32, #tpu.memory_space<vmem>>, vector<8x32xf32>
    %34 = vector.broadcast %23 : vector<8x1xf32> to vector<8x32xf32>
    %35 = arith.mulf %34, %33 : vector<8x32xf32>
    %cst_26 = arith.constant dense<0.000000e+00> : vector<8x32xf32>
    %36 = tpu.matmul %26, %8, %cst_26 {dimension_numbers = #tpu.dot_dimension_numbers<[1], [0], [0], [1], [0, 0, 1, 1], [], []>} : vector<8x8xf32>, vector<8x32xf32>, vector<8x32xf32> -> vector<8x32xf32>
    %37 = arith.addf %35, %36 : vector<8x32xf32>
    %c0_27 = arith.constant 0 : index
    %c0_28 = arith.constant 0 : index
    %38 = vector.load %arg11[%c0_27, %c0_28] : memref<8x32xf32, #tpu.memory_space<vmem>>, vector<8x32xf32>
    tpu.vector_store %arg11[%c0_27, %c0_28], %37 {strides = array<i32>} : memref<8x32xf32, #tpu.memory_space<vmem>>, vector<8x32xf32>,
    %c0_29 = arith.constant 0 : index
    %c0_30 = arith.constant 0 : index
    %39 = vector.load %arg9[%c0_29, %c0_30] : memref<8x1xf32, #tpu.memory_space<vmem>>, vector<8x1xf32>
    tpu.vector_store %arg9[%c0_29, %c0_30], %21 {strides = array<i32>} : memref<8x1xf32, #tpu.memory_space<vmem>>, vector<8x1xf32>,
    %c0_i32_31 = arith.constant 0 : i32
    %40 = arith.cmpi eq, %arg2, %c0_i32_31 : i32
    %41 = arith.extui %40 : i1 to i32
    %c0_i32_32 = arith.constant 0 : i32
    %42 = arith.cmpi ne, %41, %c0_i32_32 : i32
    scf.if %42 {
      %c0_33 = arith.constant 0 : index
      %c0_34 = arith.constant 0 : index
      %43 = vector.load %arg10[%c0_33, %c0_34] : memref<8x1xf32, #tpu.memory_space<vmem>>, vector<8x1xf32>
      %44 = tpu.reciprocal %43 {approx = true} : vector<8x1xf32> -> vector<8x1xf32>
      %45 = arith.mulf %43, %44 : vector<8x1xf32>
      %cst_35 = arith.constant 2.000000e+00 : f32
      %46 = vector.broadcast %cst_35 : f32 to vector<8x1xf32>
      %47 = arith.subf %46, %45 : vector<8x1xf32>
      %48 = arith.mulf %44, %47 : vector<8x1xf32>
      %c0_36 = arith.constant 0 : index
      %c0_37 = arith.constant 0 : index
      %49 = vector.load %arg11[%c0_36, %c0_37] : memref<8x32xf32, #tpu.memory_space<vmem>>, vector<8x32xf32>
      %50 = vector.broadcast %48 : vector<8x1xf32> to vector<8x32xf32>
      %51 = arith.mulf %49, %50 : vector<8x32xf32>
      %c0_38 = arith.constant 0 : index
      %c0_39 = arith.constant 0 : index
      %c0_40 = arith.constant 0 : index
      %52 = vector.load %arg7[%c0_38, %c0_39, %c0_40] : memref<1x8x32xf32, #tpu.memory_space<vmem>>, vector<1x8x32xf32>
      %53 = vector.shape_cast %52 : vector<1x8x32xf32> to vector<8x32xf32>
      %54 = vector.shape_cast %51 : vector<8x32xf32> to vector<1x8x32xf32>
      tpu.vector_store %arg7[%c0_38, %c0_39, %c0_40], %54 {strides = array<i32>} : memref<1x8x32xf32, #tpu.memory_space<vmem>>, vector<1x8x32xf32>,
    } else {
    }
    return
  }
  func.func @transform_0(%arg0: i32, %arg1: i32, %arg2: i32) -> (i32, i32, i32) {
    %c0_i32 = arith.constant 0 : i32
    %c0_i32_0 = arith.constant 0 : i32
    return %arg0, %arg1, %c0_i32 : i32, i32, i32
  }
  func.func @transform_1(%arg0: i32, %arg1: i32, %arg2: i32) -> (i32, i32, i32) {
    %c0_i32 = arith.constant 0 : i32
    %c0_i32_0 = arith.constant 0 : i32
    return %arg0, %arg2, %c0_i32 : i32, i32, i32
  }
  func.func @transform_2(%arg0: i32, %arg1: i32, %arg2: i32) -> (i32, i32, i32) {
    %c0_i32 = arith.constant 0 : i32
    %c0_i32_0 = arith.constant 0 : i32
    return %arg0, %arg2, %c0_i32 : i32, i32, i32
  }
  func.func @transform_3(%arg0: i32, %arg1: i32, %arg2: i32) -> (i32, i32, i32) {
    %c0_i32 = arith.constant 0 : i32
    return %arg0, %arg1, %arg2 : i32, i32, i32
  }
  func.func @transform_4(%arg0: i32, %arg1: i32, %arg2: i32) -> (i32, i32, i32) {
    %c0_i32 = arith.constant 0 : i32
    %c0_i32_0 = arith.constant 0 : i32
    return %arg0, %arg1, %c0_i32 : i32, i32, i32
  }
  func.func @transform_5(%arg0: i32, %arg1: i32, %arg2: i32) -> (i32, i32, i32) {
    %c0_i32 = arith.constant 0 : i32
    return %arg0, %arg1, %arg2 : i32, i32, i32
  }
}

</mosaic_0001>

<bundles_post_ra>
// kernel: tpu_custom_call.1
= control target key start
LH: loop header
LB: loop body
LE: loop exit
PB: predicated region body
PF: predicated region fallthrough
CT: control target
= control target key end

     0   :  { %s1370_s0 = inlined_call_operand.hbm [shape: f32[6,8,32], index: 0, kind: input, shape index: {}]   ;;  %s1371_s1 = inlined_call_operand.hbm [shape: f32[6,8,32], index: 1, kind: input, shape index: {}]   ;;  %s1372_s2 = inlined_call_operand.hbm [shape: f32[6,8,32], index: 2, kind: input, shape index: {}]   ;;  %s1373_s3 = inlined_call_operand.hbm [shape: f32[6,8,8], index: 3, kind: input, shape index: {}]   ;;  %s1374_s4 = inlined_call_operand.hbm [shape: f32[6,8,32], index: 4, kind: output, shape index: {0}]   ;;  %s1375_s5 = inlined_call_operand.hbm [shape: f32[6,8,8], index: 5, kind: output, shape index: {1}]  }
   0x1   :  { %1381 = sst [smem:[#allocation27_spill]] %s1370_s0 }
   0x2   :  { %1382 = sst [smem:[#allocation28_spill]] %s1371_s1 }
   0x3   :  { %11 = vsyncpa [#allocation6], 0 }
   0x4   :  { %13 = vsyncpa [#allocation6 + $0x1], 0 }
   0x5   :  { %14 = vsyncpa [#allocation9], 0 }
   0x6   :  { %16 = vsyncpa [#allocation9 + $0x1], 0 }
   0x7   :  { %17 = vsyncpa [#allocation12], 0 }
   0x8   :  { %19 = vsyncpa [#allocation12 + $0x1], 0 }
   0x9   :  { %20 = vsyncpa [#allocation7], 0 }
   0xa   :  { %22 = vsyncpa [#allocation7 + $0x1], 0 }
   0xb   :  { %23 = vsyncpa [#allocation15], 0 }
   0xc   :  { %25 = vsyncpa [#allocation15 + $0x1], 0  ;;  %s1148_s18 = smov 0   ;;  %s1150_s19 = smov 0  }
   0xd   :  { %s1152_s20 = smov 0   ;;  %s1154_s21 = smov 0  }
   0xe   :  { %s1156_s22 = smov 0   ;;  %s1158_s23 = smov 0  }
   0xf LB: > { %1383 = sst [smem:[#allocation21_spill]] %s1093_s18  ;;  %s1179_s24 = sadd.s32 4294967295, %s1113_s23   ;;  %s1113_s23 = sphi %s1158_s23, %s31_s23   ;;  %s1109_s22 = sphi %s1156_s22, %s1402_s22   ;;  %s1105_s21 = sphi %s1154_s21, %s1401_s21   ;;  %s1101_s20 = sphi %s1152_s20, %s1400_s20   ;;  %s1097_s19 = sphi %s1150_s19, %s1404_s19   ;;  %s1093_s18 = sphi %s1148_s18, %s1403_s18  }
  0x10   : > { %1384 = sst [smem:[#allocation22_spill]] %s1101_s20  ;;  %s750_s25 = sadd.s32 4294967294, %s1113_s23  }
  0x11   : > { %1385 = sst [smem:[#allocation23_spill]] %s1109_s22  ;;  %s50_s26 = sadd.s32 1, %s1109_s22 }
  0x12   : > { %s59_s27 = sadd.s32 1, %s1101_s20  ;;  %p52_p0 = scmp.ge.s32.totalorder %s50_s26, 6 }
  0x13   : > { %p66_p1 = scmp.ne.s32.totalorder %s1101_s20, %s1097_s19  ;;  %p67_p2 = scmp.eq.s32.totalorder %s1113_s23, 0 }
  0x14   : > { %p72_p3 = scmp.ne.s32.totalorder %s1097_s19, %s1093_s18  ;;  %s1406_s26 = smov (%p52_p0, %s50_s26), 0 }
  0x15   : > { %1386 = sst [smem:[#allocation24_spill]] %s1406_s26  ;;  %p1191_p4 = por %p67_p2, %p66_p1 }
  0x16   : > { %p73_p5 = scmp.eq.s32.totalorder %s1179_s24, 0  ;;  %s54_s29 = ssub.s32 %s1109_s22, %s1406_s26 }
  0x17   : > { %p184_p6 = scmp.eq.s32.totalorder %s1179_s24, 5  ;;  %p57_p7 = scmp.eq.s32.totalorder %s54_s29, 0 }
  0x18   : > { %p1199_p8 = por %p73_p5, %p72_p3  ;;  %p190_p10 = scmp.eq.s32.totalorder %s750_s25, 5 }
  0x19   : > { %p1203_p9 = por %p184_p6, %p66_p1  ;;  %p809_p12 = scmp.lt.s32.totalorder %s1113_s23, 6 }
  0x1a   : > { %s1208_s7 = scalar_select %p57_p7, %s1101_s20, %s59_s27  }
  0x1b   : > { %p1210_p11 = por %p190_p10, %p72_p3  ;;  %s1216_s9 = sand.u32 1, %s1101_s20  }
  0x1c   : > { %1390 = sst [smem:[#allocation25_spill]] %s1208_s7  ;;  %s1219_s10 = sshll.u32 %s1216_s9, 3 }
  0x1d   : > { %s1391_s8 = scalar_select %p1210_p11, 1, 0 }
  0x1e   : > { %s1222_s11 = sshll.u32 %s1109_s22, 3  ;;  %p1226_p13 = pnand %p809_p12, %p1191_p4 }
  0x1f   : > { %1392 = sst [smem:[#allocation26_spill]] %s1391_s8  ;;  %s260_s13 = sand.u32 1, %s1113_s23  }
  0x20   : > { %s1394_s1 = sld [smem:[#allocation28_spill]]  ;;  %s264_s25 = scalar_lea.vmem [#allocation8], %s1219_s10 }
  0x21   : > { %s273_s27 = sshll.u32 %s264_s25, 4  ;;  %s261_s28 = scalar_lea.sflag [#allocation9], %s260_s13  ;;  %s274_s27 = int_to_ptr.vmem [resolvable:$true] %s273_s27 }
  0x22   : > { %p761_p0 = scmp.ge.s32.totalorder %s1113_s23, 1  ;;  %p319_p1 = scmp.lt.s32.totalorder %s1113_s23, 7 }
  0x23   : > { %s1396_s0 = sld [smem:[#allocation27_spill]]  ;;  %s241_s13 = scalar_lea.sflag [#allocation6], %s1216_s9 }
  0x24   : > { %p1240_p2 = pnand %p761_p0, %p319_p1  ;;  %s289_s22 = scalar_lea.hbm %s1372_s2, %s1222_s11 }
  0x25   : > { %s291_s7 = sshll.u32 %s289_s22, 4  ;;  %s284_s20 = scalar_lea.vmem [#allocation10], %s1219_s10  ;;  %s292_s7 = int_to_ptr.hbm [resolvable:$true] %s291_s7 }
  0x26   : > { %s269_s16 = scalar_lea.hbm %s1394_s1, %s1222_s11  ;;  %s244_s1 = scalar_lea.vmem [#allocation5], %s1219_s10 }
  0x27   : > { %s271_s17 = sshll.u32 %s269_s16, 4  ;;  %s253_s26 = sshll.u32 %s244_s1, 4  ;;  %s272_s17 = int_to_ptr.hbm [resolvable:$true] %s271_s17  ;;  %s254_s26 = int_to_ptr.vmem [resolvable:$true] %s253_s26 }
  0x28   : > { %795 = dma.hbm_to_vmem [thread:$0]  (!%p1226_p13), %s272_s17, 128, %s274_s27, %s261_s28  }
  0x29   : > { %s249_s16 = scalar_lea.hbm %s1396_s0, %s1222_s11  ;;  %s293_s14 = sshll.u32 %s284_s20, 4  ;;  %s294_s14 = int_to_ptr.vmem [resolvable:$true] %s293_s14 }
  0x2a   : > { %s251_s25 = sshll.u32 %s249_s16, 4  ;;  %s310_s16 = scalar_lea.hbm %s1373_s3, %s1222_s11  ;;  %s252_s25 = int_to_ptr.hbm [resolvable:$true] %s251_s25 }
  0x2b   : > { %792 = dma.hbm_to_vmem [thread:$0]  (!%p1226_p13), %s252_s25, 128, %s254_s26, %s241_s13  }
  0x2c   : > { %798 = dma.hbm_to_vmem [thread:$0]  (!%p1226_p13), %s292_s7, 128, %s294_s14, %s261_s28  }
  0x2d   : > { %s304_s0 = scalar_lea.vmem [#allocation11], %s1219_s10  ;;  %s312_s18 = sshll.u32 %s310_s16, 4  ;;  %s313_s18 = int_to_ptr.hbm [resolvable:$true] %s312_s18 }
  0x2e   : > { %s314_s8 = sshll.u32 %s304_s0, 4  ;;  %s301_s26 = scalar_lea.sflag [#allocation12], %s1216_s9  ;;  %s315_s8 = int_to_ptr.vmem [resolvable:$true] %s314_s8 }
  0x2f   : > { %801 = dma.hbm_to_vmem [thread:$0]  (!%p1226_p13), %s313_s18, 128, %s315_s8, %s301_s26  }
  0x30   : > { %323 = sbr.rel (%p1240_p2) target bundleno = 673 (0x2a1), region = 36  ;;  %s1270_s20 = sand.u32 (!%p1240_p2), 1, %s1097_s19  }
  0x31   : > { %s1273_s22 = sshll.u32 (!%p1240_p2), %s1270_s20, 3  ;;  %s326_s7 = scalar_lea.sflag (!%p1240_p2), [#allocation6], %s1270_s20 }
  0x32   : > { %s329_s0 = scalar_lea.vmem (!%p1240_p2), [#allocation5], %s1273_s22 }
  0x35   : > { %1072 = dma.done.wait (%p1199_p8), %s326_s7, 128  }
  0x36   : > { %1074 = vsyncadd (%p1199_p8), %s326_s7, 4294967168  ;;  %s335_s18 = sand.u32 1, %s1179_s24   ;;  %s339_s9 = scalar_lea.vmem [#allocation8], %s1273_s22 }
  0x37   : > { %s336_s8 = scalar_lea.sflag [#allocation9], %s335_s18 }
  0x38   : > { %1076 = dma.done.wait (%p1199_p8), %s336_s8, 256  }
  0x39   : > { %1078 = vsyncadd (%p1199_p8), %s336_s8, 4294967040  ;;  %s349_s10 = scalar_lea.vmem [#allocation10], %s1273_s22  ;;  %s356_s11 = scalar_lea.sflag [#allocation12], %s1270_s20 }
  0x3a   : > { %s359_s12 = scalar_lea.vmem [#allocation11], %s1273_s22 }
  0x3b   : > { %1080 = dma.done.wait (%p1199_p8), %s356_s11, 128  }
  0x3c   : > { %1082 = vsyncadd (%p1199_p8), %s356_s11, 4294967168  ;;  %vm414_vm0 = vcmask 261120   ;;  %v1115_v0 = vmov 0.0   ;;  %v417_v1 = vld [vmem:[%s339_s9] sm:$0xff]  ;;  %v416_v2 = vld [vmem:[%s329_s0] sm:$0xff]  ;;  %vm411_vm1 = vcmask 7168  }
  0x3d   : > { %415 = vst.msk [vmem:[#allocation4] sm:$0xff] %vm414_vm0, %v1115_v0  ;;  %768 = vmatpush.xpose.msk.msra.mxu0 %vm414_vm0, %v417_v1  ;;  %v419_v3 = vmul.f32 0.17677669, %v416_v2  ;;  %v1116_v4 = vmov -1e+30   ;;  %v420_v5 = vld [vmem:[%s359_s12] sm:$0xff] }
  0x3e   : > { %412 = vst.msk [vmem:[#allocation2] sm:$0xff] %vm411_vm1, %v1116_v4  ;;  %vm448_vm2 = vcmask 64512   ;;  %s406_s24 = scalar_lea.vmem [#allocation14], %s1273_s22  ;;  %v1117_v9 = vmov 0   ;;  %v418_v14 = vld [vmem:[%s349_s10] sm:$0xff]  ;;  %s773_s30 = sshll.u32 %s1105_s21, 3 }
  0x3f   : > { %413 = vst.msk [vmem:[#allocation3] sm:$0xff] %vm411_vm1, %v1115_v0  ;;  %862 = vset.pattern.permute.xlu0 %v1117_v9  ;;  %863 = vset.pattern.permute.xlu1 %v1117_v9  ;;  %s556_s25 = scalar_lea.hbm %s1375_s5, %s773_s30  ;;  %s558_s13 = sshll.u32 %s406_s24, 4  ;;  %s559_s13 = int_to_ptr.vmem [resolvable:$true] %s558_s13 }
  0x40   : > { %769 = vmatmul.msk.f32.vlgmr.msra.gmra.mxu0 %vm414_vm0, %v419_v3  ;;  %864 = vset.pattern.permute.xlu2 %v1117_v9  ;;  %s560_s17 = sshll.u32 %s556_s25, 4  ;;  %s529_s27 = scalar_lea.sflag [#allocation15], %s1270_s20  ;;  %s561_s17 = int_to_ptr.hbm [resolvable:$true] %s560_s17 }
  0x41   : > { %499 = vmatpush.msra.mxu1 %v418_v14  ;;  %s1005_s14 = sshra.s32 %s561_s17, 4  ;;  %s1011_s26 = scalar_lea.hbm %s1375_s5, 48  ;;  %s1006_s14 = int_to_ptr.hbm [resolvable:$true] %s1005_s14 }
  0x42   : > { %s1007_s15 = scalar_lea.hbm %s1006_s14, 8  ;;  %p1012_p6 = scmp.lt.s32.totalorder %s1006_s14, %s1375_s5 }
  0x43   : > { %p1008_p3 = scmp.ne.s32.totalorder %s1006_s14, %s1007_s15  ;;  %p1013_p7 = scmp.lt.s32.totalorder %s1011_s26, %s1007_s15 }
  0x45   : > { %v450_v10 = vld [vmem:[#allocation2] sm:$0xff]  ;;  %p1009_p4 = pnand %p1008_p3, %p1203_p9  ;;  %p1014_p8 = por %p1013_p7, %p1012_p6 }
  0x47   : > { %p1010_p5 = pneg %p1009_p4 }
  0x49   : > { %p1015_p10 = pnand %p1014_p8, %p1010_p5 }
  0xbd   : > { %v445_v6 = vpop.f32.mrf.mxu0 }
  0xbe   : > { %v446_v7 = vadd.f32 %v445_v6, %v420_v5 }
  0xc0   : > { %v451_v8 = vsel %vm448_vm2, %v446_v7, -inf  ;;  %449 = vst.msk [vmem:[%s406_s24] sm:$0xff] %vm448_vm2, %v446_v7 }
  0xc1   : > { %452 = vmax.xlane.f32.xlu0 %v451_v8 }
 0x134   : > { %v453_v11 = vpop.xlane.xlu0 %452 }
 0x135   : > { %v454_v12 = vmax.f32 %v450_v10, %v453_v11 }
 0x137   : > { %v455_v13 = vsub.f32 %v450_v10, %v454_v12  ;;  %506 = vst.msk [vmem:[#allocation2] sm:$0xff] %vm411_vm1, %v454_v12  ;;  %460 = vperm.xlu0 %862, %v454_v12  }
 0x139   : > { %v456_v20 = vmul.f32 1.442695, %v455_v13 }
 0x1a9   : > { %v461_v15 = vpop.permute.xlu0 %460 }
 0x1aa   : > { %v463_v16 = vsub.f32 %v446_v7, %v461_v15 }
 0x1ac   : > { %v464_v17 = vmul.f32 1.442695, %v463_v16 }
 0x1ae   : > { %865 = vpow2.f32 %v464_v17 }
 0x1af   : > { %867 = vpow2.f32 %v456_v20 }
 0x1b4   : > { %v866_v18 = vpop.eup %865 }
 0x1b5   : > { %770 = vmatmul.msk.f32.vlgmr.msra.gmra.mxu1 %vm448_vm2, %v866_v18  ;;  %v468_v19 = vsel %vm448_vm2, %v866_v18, 0.0  ;;  %v868_v21 = vpop.eup %867 }
 0x1b6   : > { %469 = vadd.xlane.f32.xlu1 %v468_v19 }
 0x1cf   : > { %477 = vperm.xlu1 %863, %v868_v21  }
 0x1d0   : > { %1018 = shalt.err (!%p1015_p10)
}
 0x1d1   : > { %786 = dma.vmem_to_hbm [thread:$0]  (%p1203_p9), %s559_s13, 128, %s561_s17, %s529_s27   ;;  %v466_v22 = vld [vmem:[#allocation3] sm:$0xff]  ;;  %v474_v30 = vld [vmem:[#allocation4] sm:$0xff] }
 0x1d2   : > { %v467_v23 = vmul.f32 %v868_v21, %v466_v22  ;;  %s540_s9 = scalar_lea.hbm %s1374_s4, %s773_s30  ;;  %s399_s10 = scalar_lea.vmem [#allocation13], %s1273_s22 }
 0x1d3   : > { %s542_s11 = sshll.u32 %s399_s10, 4  ;;  %s544_s12 = sshll.u32 %s540_s9, 4  ;;  %s543_s11 = int_to_ptr.vmem [resolvable:$true] %s542_s11  ;;  %s545_s12 = int_to_ptr.hbm [resolvable:$true] %s544_s12 }
 0x1d4   : > { %s524_s24 = scalar_lea.sflag [#allocation7], %s1270_s20  ;;  %s1033_s28 = sshra.s32 %s545_s12, 4  ;;  %s1034_s28 = int_to_ptr.hbm [resolvable:$true] %s1033_s28 }
 0x1d5   : > { %s1035_s29 = scalar_lea.hbm %s1034_s28, 8  ;;  %s1039_s22 = scalar_lea.hbm %s1374_s4, 48 }
 0x1d6   : > { %p1036_p12 = scmp.ne.s32.totalorder %s1034_s28, %s1035_s29  ;;  %p1040_p1 = scmp.lt.s32.totalorder %s1034_s28, %s1374_s4 }
 0x1d7   : > { %p1041_p2 = scmp.lt.s32.totalorder %s1039_s22, %s1035_s29 }
 0x1d8   : > { %p1037_p13 = pnand %p1036_p12, %p1203_p9 }
 0x1d9   : > { %p1042_p3 = por %p1041_p2, %p1040_p1 }
 0x1da   : > { %p1038_p0 = pneg %p1037_p13 }
 0x1dc   : > { %p1043_p4 = pnand %p1042_p3, %p1038_p0 }
 0x229   : > { %v470_v24 = vpop.xlane.xlu1 %469 }
 0x22a   : > { %v471_v25 = vadd.f32 %v470_v24, %v467_v23 }
 0x22c   : > { %473 = vst.msk [vmem:[#allocation3] sm:$0xff] %vm411_vm1, %v471_v25 }
 0x232   : > { %v501_v34 = vpop.f32.mrf.mxu1 }
 0x233   : > { %v510_v26 = vld [vmem:[#allocation3] sm:$0xff] }
 0x234   : > { %869 = vrcp.f32 %v510_v26 }
 0x23a   : > { %v870_v27 = vpop.eup %869 }
 0x23b   : > { %v512_v28 = vmul.f32 %v870_v27, %v510_v26 }
 0x23d   : > { %v513_v29 = vsub.f32 2.0, %v512_v28 }
 0x23f   : > { %v514_v31 = vmul.f32 %v870_v27, %v513_v29 }
 0x241   : > { %v478_v32 = vpop.permute.xlu1 %477  ;;  %518 = vperm.xlu2 %864, %v514_v31  }
 0x242   : > { %v480_v33 = vmul.f32 %v478_v32, %v474_v30 }
 0x244   : > { %v504_v35 = vadd.f32 %v501_v34, %v480_v33 }
 0x246   : > { %505 = vst.msk [vmem:[#allocation4] sm:$0xff] %vm414_vm0, %v504_v35 }
 0x24d   : > { %v515_v36 = vld [vmem:[#allocation4] sm:$0xff] }
 0x29b   : > { %v519_v37 = vpop.permute.xlu2 %518 }
 0x29c   : > { %v521_v38 = vmul.f32 %v519_v37, %v515_v36 }
 0x29e   : > { %522 = vst.msk [vmem:[%s399_s10] sm:$0xff] %vm414_vm0, %v521_v38 }
 0x29f   : > { %1046 = shalt.err (!%p1043_p4)
}
 0x2a0   : > { %785 = dma.vmem_to_hbm [thread:$0]  (%p1203_p9), %s543_s11, 128, %s545_s12, %s524_s24  }
 0x2a1 PF: > { %s1397_s20 = sld [smem:[#allocation21_spill]]  ;;  %p810_p5 = scmp.ge.s32.totalorder %s1113_s23, 2 }
 0x2a3   : > { %p803_p6 = pnand %p810_p5, %p1210_p11 }
 0x2a5   : > { %p804_p7 = pneg %p803_p6 }
 0x2a7   : > { %s572_s27 = sand.u32 1, %s1397_s20  }
 0x2a8   : > { %s573_s14 = scalar_lea.sflag [#allocation7], %s572_s27 }
 0x2a9   : > { %1084 = dma.done.wait (%p804_p7), %s573_s14, 128  }
 0x2aa   : > { %1086 = vsyncadd (%p804_p7), %s573_s14, 4294967168  ;;  %s583_s15 = scalar_lea.sflag [#allocation15], %s572_s27 }
 0x2ab   : > { %1088 = dma.done.wait (%p804_p7), %s583_s15, 128  }
 0x2ac   : > { %1090 = vsyncadd (%p804_p7), %s583_s15, 4294967168  ;;  %s31_s23 = sadd.s32 1, %s1113_s23   ;;  %s1399_s6 = sld [smem:[#allocation22_spill]] }
 0x2ad   : > { %p28_p8 = scmp.ge.s32.totalorder %s31_s23, 8   ;;  %s1400_s20 = sld [smem:[#allocation25_spill]] }
 0x2ae   : > { %s1401_s21 = sld [smem:[#allocation23_spill]]  ;;  %s1403_s18 = smov %s1097_s19 }
 0x2af   : > { %s1402_s22 = sld [smem:[#allocation24_spill]]  ;;  %30 = sbr.rel (!%p28_p8) target bundleno = 15 (0xf), region = 143 }
 0x2b2   : > { %s1404_s19 = smov %s1399_s6 }
 0x2b4   :  { %589 = vsyncpa [#allocation6], 1 }
 0x2b5   :  { %591 = vsyncpa [#allocation6 + $0x1], 1 }
 0x2b6   :  { %592 = vsyncpa [#allocation9], 1 }
 0x2b7   :  { %594 = vsyncpa [#allocation9 + $0x1], 1 }
 0x2b8   :  { %595 = vsyncpa [#allocation12], 1 }
 0x2b9   :  { %597 = vsyncpa [#allocation12 + $0x1], 1 }
 0x2ba   :  { %598 = vsyncpa [#allocation7], 1 }
 0x2bb   :  { %600 = vsyncpa [#allocation7 + $0x1], 1 }
 0x2bc   :  { %601 = vsyncpa [#allocation15], 1 }
 0x2bd   :  { %603 = vsyncpa [#allocation15 + $0x1], 1 }

</bundles_post_ra>
